<compile_context>
chip_gen: v6e
topology: v6e:2x2x1
jax: 0.10.0
libtpu: 0.0.40
codegen_flags: <defaults>
</compile_context>

<pallas_src>
import jax
import jax.numpy as jnp
from jax.experimental import pallas as pl
from jax.experimental.pallas import tpu as pltpu


def _model_block_kernel(x_ref, o_ref):
    # x_ref: (TN, B, F) block of TN independent problem instances.
    x = x_ref[...].astype(jnp.float32)                    # (TN, B, F)
    tn, b, f = x.shape

    # sigmoid(cat(x, x, dim=1)) is just sigmoid(x) duplicated along lanes;
    # sigmoid is evaluated once on the (TN, B, F) tile.
    sig_x = jax.nn.sigmoid(x)                              # (TN, B, F)
    sig_cat = jnp.concatenate([sig_x, sig_x], axis=-1)     # (TN, B, 2F)

    # Per-instance row sums laid out along the LANE axis: ones(1,F) . x^T per
    # instance.  The skinny batched dot gives the sublane->lane transpose for
    # free; precision=HIGHEST keeps full f32 accuracy (no bf16 demotion of x).
    ones_row = jnp.ones((tn, 1, f), jnp.float32)
    row_sums = jnp.einsum(
        "nof,nbf->nob", ones_row, x,
        precision=jax.lax.Precision.HIGHEST,
        preferred_element_type=jnp.float32,
    )                                                      # (TN, 1, B) == (TN, 1, 2F)
    sig_s = jax.nn.sigmoid(row_sums)                       # (TN, 1, 2F)

    # Right-aligned broadcast: out[n, i, j] = sig_cat[n, i, j] + sig_s[n, 0, j]
    o_ref[...] = (sig_cat + sig_s).astype(o_ref.dtype)


def _forward_impl(xs, *, instances_per_block=None):
    """xs: (N, B, F) stack of independent problem instances."""
    n, b, f = xs.shape
    assert 2 * f == b, "the module's (B,2F)+(B,) broadcast requires 2*F == B"
    tn = min(n, 16) if instances_per_block is None else instances_per_block
    assert n % tn == 0
    return pl.pallas_call(
        _model_block_kernel,
        out_shape=jax.ShapeDtypeStruct((n, b, 2 * f), xs.dtype),
        grid=(n // tn,),
        in_specs=[pl.BlockSpec((tn, b, f), lambda i: (i, 0, 0))],
        out_specs=pl.BlockSpec((tn, b, 2 * f), lambda i: (i, 0, 0)),
        compiler_params=pltpu.CompilerParams(
            dimension_semantics=("parallel",),   # shards instance blocks across TCs (v7x)
        ),
    )(xs)


def model_forward(x, y):
    """Single-instance forward, exactly matching Model.forward(x, y)."""
    b, f = x.shape
    assert 2 * f == b, "the module's (B,2F)+(B,) broadcast requires 2*F == B"
    assert y.shape[0] == b   # y is accepted but overwritten before use
    del y                    # never read by the reference forward -> not passed in
    return _forward_impl(x[None], instances_per_block=1)[0]


def model_forward_batched(xs, ys=None):
    """Many independent (B, F) instances in ONE pallas_call (grid over batch)."""
    del ys
    return _forward_impl(xs)


def _reference(x):
    # Pure-JAX reference of the exact PyTorch semantics (works for 2-D and 3-D).
    sig_cat = jax.nn.sigmoid(jnp.concatenate([x, x], axis=-1))
    sig_sum = jax.nn.sigmoid(jnp.sum(x, axis=-1))[..., None, :]
    return sig_cat + sig_sum


if __name__ == "__main__":
    key = jax.random.PRNGKey(0)
    kx, ky, kb = jax.random.split(key, 3)
    B, F = 8, 4  # small shapes; 2*F == B as required by the module's broadcast
    x = jax.random.normal(kx, (B, F), dtype=jnp.float32)
    y = jax.random.normal(ky, (B, F), dtype=jnp.float32)

    # Single instance: matches Model.forward(x, y).
    out = model_forward(x, y)
    jax.block_until_ready(out)
    assert out.shape == (B, 2 * F)
    assert jnp.allclose(out, _reference(x), atol=1e-5, rtol=1e-5)

    # Batched: many instances amortized over one pallas_call (grid over batch).
    N = 64
    xs = jax.random.normal(kb, (N, B, F), dtype=jnp.float32)
    out_b = model_forward_batched(xs)
    jax.block_until_ready(out_b)
    assert out_b.shape == (N, B, 2 * F)
    assert jnp.allclose(out_b, _reference(xs), atol=1e-5, rtol=1e-5)

    print("KERNEL_OK")
</pallas_src>

<mosaic_0001>
module attributes {stable_mosaic.version = 11 : i64} {
  func.func @_model_block_kernel(%arg0: i32, %arg1: memref<1x8x4xf32, #tpu.memory_space<vmem>>, %arg2: memref<1x8x8xf32, #tpu.memory_space<vmem>>) attributes {dimension_semantics = [#tpu.dimension_semantics<parallel>], iteration_bounds = array<i64: 1>, scalar_prefetch = 0 : i64, scratch_operands = 0 : i64, tpu.core_type = #tpu.core_type<tc>, window_params = [{transform_indices = @transform_0, window_bounds = array<i64: 1, 8, 4>}, {transform_indices = @transform_1, window_bounds = array<i64: 1, 8, 8>}]} {
    %c0 = arith.constant 0 : index
    %c0_0 = arith.constant 0 : index
    %c0_1 = arith.constant 0 : index
    %0 = vector.load %arg1[%c0, %c0_0, %c0_1] : memref<1x8x4xf32, #tpu.memory_space<vmem>>, vector<1x8x4xf32>
    %1 = arith.negf %0 : vector<1x8x4xf32>
    %2 = math.exp %1 : vector<1x8x4xf32>
    %cst = arith.constant 1.000000e+00 : f32
    %3 = vector.broadcast %cst : f32 to vector<1x8x4xf32>
    %4 = arith.addf %3, %2 : vector<1x8x4xf32>
    %5 = arith.divf %3, %4 : vector<1x8x4xf32>
    %6 = tpu.concatenate %5, %5 in 2 : vector<1x8x4xf32>, vector<1x8x4xf32> -> vector<1x8x8xf32>
    %cst_2 = arith.constant 1.000000e+00 : f32
    %7 = vector.broadcast %cst_2 : f32 to vector<1x1x4xf32>
    "tpu.trace_start"() <{level = 10 : i32, message = "nof,nbf->nob"}> : () -> ()
    %cst_3 = arith.constant dense<0.000000e+00> : vector<1x1x8xf32>
    %8 = tpu.matmul %7, %0, %cst_3 {dimension_numbers = #tpu.dot_dimension_numbers<[2], [2], [1], [1], [0, 0, 0, 1, 1, 1], [0], [0]>, precision = #tpu.contract_precision<fp32>} : vector<1x1x4xf32>, vector<1x8x4xf32>, vector<1x1x8xf32> -> vector<1x1x8xf32>
    "tpu.trace_stop"() : () -> ()
    %9 = arith.negf %8 : vector<1x1x8xf32>
    %10 = math.exp %9 : vector<1x1x8xf32>
    %cst_4 = arith.constant 1.000000e+00 : f32
    %11 = vector.broadcast %cst_4 : f32 to vector<1x1x8xf32>
    %12 = arith.addf %11, %10 : vector<1x1x8xf32>
    %13 = arith.divf %11, %12 : vector<1x1x8xf32>
    %14 = vector.broadcast %13 : vector<1x1x8xf32> to vector<1x8x8xf32>
    %15 = arith.addf %6, %14 : vector<1x8x8xf32>
    %c0_5 = arith.constant 0 : index
    %c0_6 = arith.constant 0 : index
    %c0_7 = arith.constant 0 : index
    %16 = vector.load %arg2[%c0_5, %c0_6, %c0_7] : memref<1x8x8xf32, #tpu.memory_space<vmem>>, vector<1x8x8xf32>
    tpu.vector_store %arg2[%c0_5, %c0_6, %c0_7], %15 {strides = array<i32>} : memref<1x8x8xf32, #tpu.memory_space<vmem>>, vector<1x8x8xf32>,
    return
  }
  func.func @transform_0(%arg0: i32) -> (i32, i32, i32) {
    %c0_i32 = arith.constant 0 : i32
    %c0_i32_0 = arith.constant 0 : i32
    %c0_i32_1 = arith.constant 0 : i32
    return %arg0, %c0_i32, %c0_i32_0 : i32, i32, i32
  }
  func.func @transform_1(%arg0: i32) -> (i32, i32, i32) {
    %c0_i32 = arith.constant 0 : i32
    %c0_i32_0 = arith.constant 0 : i32
    %c0_i32_1 = arith.constant 0 : i32
    return %arg0, %c0_i32, %c0_i32_0 : i32, i32, i32
  }
}

</mosaic_0001>

<bundles_post_ra>
// kernel: tpu_custom_call.1
= control target key start
LH: loop header
LB: loop body
LE: loop exit
PB: predicated region body
PF: predicated region fallthrough
CT: control target
= control target key end

     0   :  { %vm20_vm0 = vcmask 31744   ;;  %v584_v1 = vmov 0.0   ;;  %vm585_vm1 = vmmov 0   ;;  %v586_v4 = vmov 0   ;;  %s618_s0 = inlined_call_operand.vmem [shape: f32[1,8,4], index: 0, kind: input, shape index: {}]   ;;  %s619_s1 = inlined_call_operand.hbm [shape: f32[1,8,8], index: 1, kind: output, shape index: {}]  }
   0x1   :  { %v9_v0 = vld [vmem:[%s618_s0] sm:$0xff]  ;;  %518 = vmatprep.subr.mxu0 %v584_v1  ;;  %520 = vmatprep.mubr.msk.f32.mxu0 %vm585_vm1, %v584_v1  ;;  %v23_v5 = vsel %vm20_vm0, 1.0, %v586_v4 }
   0x2   :  { %v501_v2 = vmul.f32 -1.442695, %v9_v0  ;;  %v26_v3 = vsel %vm20_vm0, %v9_v0, 0  ;;  %523 = vmatprep.subr.mxu1 %v584_v1  ;;  %v95_v7 = vsub.f32 %v23_v5, %v23_v5  ;;  %525 = vmatprep.mubr.msk.f32.mxu1 %vm585_vm1, %v584_v1 }
   0x3   :  { %v59_v6 = vand.u32 4294901760, %v26_v3 }
   0x4   :  { %6 = vsyncpa [#allocation3], 0  ;;  %554 = vpow2.f32 %v501_v2  ;;  %v96_v8 = vand.u32 4294901760, %v95_v7  ;;  %v587_v15 = vmov 1.0   ;;  %s588_s0 = smov 4   ;;  %v480_v39 = vlaneseq  ;;  %s589_s8 = smov [#allocation2]  }
   0x5   :  { %519 = vmatpush3.xpose.msra.mxu0 %v59_v6  ;;  %v136_v9 = vsub.f32 %v26_v3, %v59_v6  ;;  %s493_s9 = sshll.u32 %s589_s8, 4  ;;  %vm485_vm2 = vcmask 64512   ;;  %s494_s9 = int_to_ptr.vmem [resolvable:$true] %s493_s9 }
   0x6   :  { %528 = vmatprep.subr.mxu0 %v584_v1  ;;  %v97_v10 = vsub.f32 %v95_v7, %v96_v8  ;;  %v481_v40 = vshrl.u32 %v480_v39, 7  ;;  %s562_s10 = scalar_lea.vmem %s494_s9, 128  ;;  %p567_p1 = scmp.lt.s32.totalorder %s494_s9, %s494_s9 }
   0x7   :  { %v137_v11 = vand.u32 4294901760, %v136_v9  ;;  %p563_p0 = scmp.ne.s32.totalorder %s494_s9, %s562_s10  ;;  %p568_p2 = scmp.lt.s32.totalorder %s562_s10, %s562_s10 }
   0x8   :  { %v98_v12 = vand.u32 4294901760, %v97_v10  ;;  %v482_v42 = vsub.s32 0, %v481_v40 }
   0x9   :  { %v138_v13 = vsub.f32 %v136_v9, %v137_v11  ;;  %p569_p3 = por %p568_p2, %p567_p1 }
   0xa   :  { %521 = vmatmul.mubr.f32.vlgmr.msra.gmra.mxu0 %v98_v12 }
   0xb   :  { %v139_v14 = vand.u32 4294901760, %v138_v13  ;;  %529 = vmatpush3.xpose.msra.mxu0 %v136_v9  ;;  %530 = vmatprep.mubr.msk.f32.mxu0 %vm585_vm1, %v584_v1  ;;  %p570_p4 = pnand %p569_p3, %p563_p0 }
   0xc   :  { %538 = vmatprep.subr.mxu0 %v584_v1 }
   0xd   :  { %524 = vmatpush3.xpose.msra.mxu1 %v139_v14 }
   0xe   :  { %533 = vmatprep.subr.mxu1 %v584_v1  ;;  %531 = vmatmul.mubr.f32.vlgmr.msra.gmra.mxu0 %v95_v7 }
   0xf   :  { %539 = vmatpush3.xpose.msra.mxu0 %v137_v11  ;;  %540 = vmatprep.mubr.msk.f32.mxu0 %vm585_vm1, %v584_v1 }
  0x10   :  { %526 = vmatmul.mubr.msk.f32.vlgmr.msra.gmra.mxu1 %vm20_vm0, %v587_v15 }
  0x11   :  { %v555_v16 = vpop.eup %554  ;;  %534 = vmatpush3.xpose.msra.mxu1 %v59_v6  ;;  %535 = vmatprep.mubr.msk.f32.mxu1 %vm585_vm1, %v584_v1 }
  0x12   :  { %543 = vmatprep.subr.mxu1 %v584_v1  ;;  %v13_v17 = vadd.f32 1.0, %v555_v16  ;;  %541 = vmatmul.mubr.msk.f32.vlgmr.msra.gmra.mxu0 %vm20_vm0, %v587_v15 }
  0x14   :  { %536 = vmatmul.mubr.f32.vlgmr.msra.gmra.mxu1 %v96_v8  ;;  %556 = vrcp.f32 %v13_v17 }
  0x15   :  { %544 = vmatpush3.xpose.msra.mxu1 %v59_v6  ;;  %545 = vmatprep.mubr.msk.f32.mxu1 %vm585_vm1, %v584_v1 }
  0x18   :  { %546 = vmatmul.mubr.msk.f32.vlgmr.msra.gmra.mxu1 %vm20_vm0, %v587_v15 }
  0x21   :  { %v557_v18 = vpop.eup %556 }
  0x22   :  { %17 = vrot.lane.b32.xlu0 %v557_v18, %s588_s0 }
  0x94   :  { %v18_v41 = vpop.permute.xlu0 %17 }
  0x95   :  { %v21_v44 = vsel %vm20_vm0, %v557_v18, %v18_v41 }
  0xca   :  { %v100_v19 = vpop.f32.mrf.mxu0 }
  0xcc   :  { %v522_v20 = vpop.f32.mrf.mxu0 }
  0xce   :  { %v250_v21 = vpop.f32.mrf.mxu0 }
  0xd0   :  { %v176_v22 = vpop.f32.mrf.mxu1  ;;  %v532_v24 = vpop.f32.mrf.mxu0 }
  0xd1   :  { %v177_v23 = vadd.f32 %v176_v22, %v100_v19 }
  0xd2   :  { %v527_v25 = vpop.f32.mrf.mxu1  ;;  %v398_v27 = vpop.f32.mrf.mxu0 }
  0xd3   :  { %v251_v26 = vadd.f32 %v250_v21, %v177_v23 }
  0xd4   :  { %v324_v28 = vpop.f32.mrf.mxu1  ;;  %v542_v30 = vpop.f32.mrf.mxu0 }
  0xd5   :  { %v325_v29 = vadd.f32 %v324_v28, %v251_v26 }
  0xd6   :  { %v537_v31 = vpop.f32.mrf.mxu1 }
  0xd7   :  { %v399_v32 = vadd.f32 %v398_v27, %v325_v29 }
  0xd8   :  { %v470_v33 = vpop.f32.mrf.mxu1 }
  0xd9   :  { %v471_v34 = vadd.f32 %v470_v33, %v399_v32 }
  0xda   :  { %v547_v35 = vpop.f32.mrf.mxu1 }
  0xdb   :  { %v505_v36 = vmul.f32 -1.442695, %v471_v34 }
  0xdd   :  { %558 = vpow2.f32 %v505_v36 }
  0xea   :  { %v559_v37 = vpop.eup %558 }
  0xeb   :  { %v477_v38 = vadd.f32 1.0, %v559_v37 }
  0xed   :  { %560 = vrcp.f32 %v477_v38 }
  0xfa   :  { %v561_v43 = vpop.eup %560 }
  0xfb   :  { %v483_v45 = vrot.slane %v561_v43, %v482_v42 }
  0xfd   :  { %v484_v46 = vadd.f32 %v483_v45, %v21_v44 }
  0xff   :  { %486 = vst.msk [vmem:[#allocation2] sm:$0xff] %vm485_vm2, %v484_v46 }
 0x100   :  { %573 = shalt.err (!%p570_p4)
}
 0x101   :  { %496 = dma.vmem_to_hbm [thread:$0]  %s494_s9, 128, %s619_s1, [#allocation3]  }
 0x102   :  { %582 = dma.done.wait [#allocation3], 128  }
 0x103   :  { %583 = vsyncadd [#allocation3], 4294967168 }
 0x104   :  { %500 = vsyncpa [#allocation3], 1 }

</bundles_post_ra>
